<compile_context>
chip_gen: v7x
topology: tpu7x:2x2x1
jax: 0.10.0
libtpu: 0.0.40
codegen_flags: <defaults>
</compile_context>

<pallas_src>
import functools

import jax
import jax.numpy as jnp
from jax.experimental import pallas as pl
from jax.experimental.pallas import tpu as pltpu


# TODO(synk): arbitrary user-supplied activation modules (the `else: act =
# activation` branch of the PyTorch module) are not supported; only the four
# named activations are.
_ACTIVATIONS = {
    "relu": lambda h: jnp.maximum(h, 0.0),
    "silu": lambda h: h * jax.nn.sigmoid(h),
    "tanh": jnp.tanh,
    "sigmoid": jax.nn.sigmoid,
}


def _round_up(x, m):
    return ((x + m - 1) // m) * m


def _sublane_multiple(dtype):
    return {4: 8, 2: 16, 1: 32}.get(jnp.dtype(dtype).itemsize, 8)


def _vmem_capacity_bytes():
    try:
        return int(pltpu.get_tpu_info().vmem_capacity_bytes)
    except Exception:
        return 64 * 1024 * 1024  # conservative fallback: fits every generation


def _th_candidates(hid_p, th_max):
    """Hidden-tile candidates: 128-multiples that divide hid_p (ascending)."""
    q = hid_p // 128
    cands = sorted(128 * k for k in range(1, q + 1) if q % k == 0)
    cands = [c for c in cands if c <= th_max]
    return cands if cands else [128]


def _choose_tiles(n, dim_p, hid_p, out_p, itemsize, sub, tm_max, th_max,
                  vmem_budget):
    """Pick (tm, th) so the double-buffered working set fits the VMEM budget."""
    tm = _round_up(max(sub, min(tm_max, _round_up(n, sub))), sub)
    ths = _th_candidates(hid_p, th_max)
    ti = len(ths) - 1
    th = ths[ti]

    def need(tm_, th_):
        # double-buffered x / W1 / W2 / out blocks + resident biases + f32 acc
        return (2 * (tm_ * dim_p + dim_p * th_ + th_ * out_p + tm_ * out_p)
                * itemsize
                + 2 * (hid_p + out_p) * 4
                + tm_ * out_p * 4)

    while need(tm, th) > vmem_budget:
        if ti > 0 and th > 256:
            ti -= 1
            th = ths[ti]
        elif tm > 128:
            tm = max(sub, _round_up(tm // 2, sub))
        elif ti > 0:
            ti -= 1
            th = ths[ti]
        elif tm > sub:
            tm = max(sub, _round_up(tm // 2, sub))
        else:
            break
    return tm, th, need(tm, th)


def _ffn_kernel(x_ref, w1_ref, b1_ref, w2_ref, b2_ref, o_ref, acc_ref, *,
                activation):
    j = pl.program_id(1)

    # First linear on this hidden tile: [tm, dim_p] @ [dim_p, th] + b1[j].
    h = jnp.dot(x_ref[...], w1_ref[...], preferred_element_type=jnp.float32)
    h = h + b1_ref[pl.ds(j, 1), :].astype(jnp.float32)
    h = _ACTIVATIONS[activation](h)

    # Partial second linear: [tm, th] @ [th, out_p].
    partial = jnp.dot(h.astype(w2_ref.dtype), w2_ref[...],
                      preferred_element_type=jnp.float32)

    # Write the first partial directly into the accumulator (saves a full
    # zero-init store plus reload per row tile).
    @pl.when(j == 0)
    def _():
        acc_ref[...] = partial

    @pl.when(j > 0)
    def _():
        acc_ref[...] += partial

    @pl.when(j == pl.num_programs(1) - 1)
    def _():
        o_ref[...] = (acc_ref[...] + b2_ref[...].astype(jnp.float32)
                      ).astype(o_ref.dtype)


@functools.partial(
    jax.jit,
    static_argnames=("activation", "tm_max", "th_max", "compute_dtype",
                     "weight_buffers", "out_features"))
def feed_forward(x, w1, b1, w2, b2, *, activation="relu", tm_max=512,
                 th_max=512, compute_dtype=None, weight_buffers=2,
                 out_features=None):
    """x: [..., dim]; w1: [dim, hidden]; w2: [hidden, out_dim]; biases 1-D.

    Returns [..., out_dim].  `compute_dtype=jnp.bfloat16` enables the bf16 MXU
    path (f32 accumulation).  `weight_buffers=3` deepens weight pipelining for
    skinny-M / decode-shaped inputs (uses extra VMEM).  `out_features` lets
    callers pass pre-padded params (see pad_feed_forward_params).
    """
    assert activation in _ACTIVATIONS, activation

    orig_shape = x.shape
    dim = orig_shape[-1]
    hidden = w1.shape[1]
    out_dim = w2.shape[1] if out_features is None else out_features

    out_dtype = x.dtype
    cdtype = jnp.dtype(compute_dtype) if compute_dtype is not None else jnp.dtype(x.dtype)
    itemsize = cdtype.itemsize
    sub = _sublane_multiple(cdtype)

    x2d = x.reshape(-1, dim)
    n = x2d.shape[0]

    # Lane-dense feature padding (128-multiples).
    dim_p = _round_up(dim, 128)
    hid_p = _round_up(hidden, 128)
    out_p = _round_up(out_dim, 128)

    # Generation-aware VMEM budget and tile selection.
    vmem_budget = int(_vmem_capacity_bytes() * 0.85)
    tm, th, vmem_need = _choose_tiles(n, dim_p, hid_p, out_p, itemsize, sub,
                                      tm_max, th_max, vmem_budget)
    n_pad = _round_up(n, tm)
    n_j = hid_p // th
    grid_m = n_pad // tm

    if compute_dtype is not None:
        x2d = x2d.astype(cdtype)
        w1 = w1.astype(cdtype)
        w2 = w2.astype(cdtype)

    def pad2(a, rows, cols):
        if a.shape == (rows, cols):
            return a  # no-op for pre-padded / already-aligned params
        return jnp.pad(a, ((0, rows - a.shape[0]), (0, cols - a.shape[1])))

    x2d = pad2(x2d, n_pad, dim_p)
    w1p = pad2(w1, dim_p, hid_p)
    w2p = pad2(w2, hid_p, out_p)
    # b1 is laid out as one resident (n_j_pad, th) block and sliced per j in
    # the kernel (no per-step bias DMA); rows padded to a sublane multiple.
    b1p = pad2(b1.reshape(1, -1), 1, hid_p).reshape(n_j, th)
    b1p = pad2(b1p, _round_up(n_j, 8), th)
    b2p = pad2(b2.reshape(1, -1), 1, out_p)

    grid = (grid_m, n_j)

    if weight_buffers > 2:
        w1_spec = pl.BlockSpec((dim_p, th), lambda i, j: (0, j),
                               pipeline_mode=pl.Buffered(weight_buffers))
        w2_spec = pl.BlockSpec((th, out_p), lambda i, j: (j, 0),
                               pipeline_mode=pl.Buffered(weight_buffers))
        vmem_need += (weight_buffers - 2) * (dim_p * th + th * out_p) * itemsize
    else:
        w1_spec = pl.BlockSpec((dim_p, th), lambda i, j: (0, j))
        w2_spec = pl.BlockSpec((th, out_p), lambda i, j: (j, 0))

    vmem_limit = min(max(int(vmem_need * 1.25), 32 * 1024 * 1024), vmem_budget)
    vmem_limit = max(vmem_limit, vmem_need)

    # Cost estimate: weights are re-streamed once per row tile; x/out once.
    b_itemsize = jnp.dtype(b1.dtype).itemsize
    flops = 2 * n_pad * dim_p * hid_p + 2 * n_pad * hid_p * out_p
    transcendentals = 0 if activation == "relu" else n_pad * hid_p
    weight_bytes = ((dim_p * hid_p + hid_p * out_p) * itemsize
                    + (hid_p + out_p) * b_itemsize)
    bytes_accessed = (n_pad * dim_p * itemsize
                      + n_pad * out_p * jnp.dtype(out_dtype).itemsize
                      + grid_m * weight_bytes)

    out = pl.pallas_call(
        functools.partial(_ffn_kernel, activation=activation),
        out_shape=jax.ShapeDtypeStruct((n_pad, out_p), out_dtype),
        grid_spec=pltpu.PrefetchScalarGridSpec(
            num_scalar_prefetch=0,
            grid=grid,
            in_specs=[
                pl.BlockSpec((tm, dim_p), lambda i, j: (i, 0)),        # x rows
                w1_spec,                                               # W1 tile
                pl.BlockSpec((b1p.shape[0], th), lambda i, j: (0, 0)),  # b1 (resident)
                w2_spec,                                               # W2 tile
                pl.BlockSpec((1, out_p), lambda i, j: (0, 0)),          # b2 (resident)
            ],
            out_specs=pl.BlockSpec((tm, out_p), lambda i, j: (i, 0)),
            scratch_shapes=[pltpu.VMEM((tm, out_p), jnp.float32)],
        ),
        compiler_params=pltpu.CompilerParams(
            dimension_semantics=("parallel", "arbitrary"),
            vmem_limit_bytes=int(vmem_limit)),
        cost_estimate=pl.CostEstimate(flops=int(flops),
                                      transcendentals=int(transcendentals),
                                      bytes_accessed=int(bytes_accessed)),
    )(x2d, w1p, b1p, w2p, b2p)

    if n_pad != n or out_p != out_dim:
        out = out[:n, :out_dim]   # only pay the slice copy when padding happened
    return out.reshape(*orig_shape[:-1], out_dim)


def pad_feed_forward_params(w1, b1, w2, b2):
    """Pre-pad parameters to 128-lane multiples ONCE (hoists the per-call
    padding copies out of the forward path).  Pass the true output width via
    feed_forward(..., out_features=out_dim) when using pre-padded params."""
    dim, hidden = w1.shape
    out_dim = w2.shape[1]
    dim_p, hid_p, out_p = (_round_up(dim, 128), _round_up(hidden, 128),
                           _round_up(out_dim, 128))
    w1p = jnp.pad(w1, ((0, dim_p - dim), (0, hid_p - hidden)))
    b1p = jnp.pad(b1, (0, hid_p - hidden))
    w2p = jnp.pad(w2, ((0, hid_p - hidden), (0, out_p - out_dim)))
    b2p = jnp.pad(b2, (0, out_p - out_dim))
    return w1p, b1p, w2p, b2p


def init_feed_forward_params(key, dim, hidden_dim, out_dim=None,
                             dtype=jnp.float32):
    """Init mirroring nn.Linear (weights stored transposed: [in, out])."""
    out_dim = dim if out_dim is None else out_dim
    k1, k2, k3, k4 = jax.random.split(key, 4)
    bound1 = 1.0 / jnp.sqrt(dim)
    bound2 = 1.0 / jnp.sqrt(hidden_dim)
    w1 = jax.random.uniform(k1, (dim, hidden_dim), dtype, -bound1, bound1)
    b1 = jax.random.uniform(k2, (hidden_dim,), dtype, -bound1, bound1)
    w2 = jax.random.uniform(k3, (hidden_dim, out_dim), dtype, -bound2, bound2)
    b2 = jax.random.uniform(k4, (out_dim,), dtype, -bound2, bound2)
    return w1, b1, w2, b2


if __name__ == "__main__":
    key = jax.random.PRNGKey(0)
    kx, kp, kq = jax.random.split(key, 3)

    # Small shapes consistent with the module: batch=2, seq=8, dim=32, hidden=64.
    batch, seq, dim, hidden_dim = 2, 8, 32, 64  # out_dim defaults to dim
    x = jax.random.normal(kx, (batch, seq, dim), jnp.float32)
    w1, b1, w2, b2 = init_feed_forward_params(kp, dim, hidden_dim)

    y = feed_forward(x, w1, b1, w2, b2, activation="relu")
    jax.block_until_ready(y)
    h_ref = jnp.maximum(x @ w1 + b1, 0.0)
    y_ref = h_ref @ w2 + b2
    assert y.shape == (batch, seq, dim), y.shape
    assert jnp.allclose(y, y_ref, atol=1e-5, rtol=1e-5)

    # Ragged rows + multi-step hidden reduction + out_dim != dim: exercises
    # lane padding, the ragged last hidden tile (320 -> 384) and output slicing.
    dim2, hidden2, out2 = 32, 320, 48
    w1b, b1b, w2b, b2b = init_feed_forward_params(kq, dim2, hidden2, out2)
    x2 = jax.random.normal(kx, (3, 5, dim2), jnp.float32)
    y2 = feed_forward(x2, w1b, b1b, w2b, b2b, activation="silu", th_max=128)
    jax.block_until_ready(y2)
    h2 = x2 @ w1b + b1b
    y2_ref = (h2 * jax.nn.sigmoid(h2)) @ w2b + b2b
    assert y2.shape == (3, 5, out2), y2.shape
    assert jnp.allclose(y2, y2_ref, atol=1e-5, rtol=1e-5)

    # Opt-in bf16 compute path (f32 accumulation) — loose tolerance vs f32 ref.
    y3 = feed_forward(x, w1, b1, w2, b2, activation="tanh",
                      compute_dtype=jnp.bfloat16)
    jax.block_until_ready(y3)
    h3 = jnp.tanh(x @ w1 + b1)
    y3_ref = h3 @ w2 + b2
    assert jnp.allclose(y3, y3_ref, atol=5e-2, rtol=5e-2)

    print("KERNEL_OK")
</pallas_src>

<mosaic_0001>
module attributes {stable_mosaic.version = 11 : i64} {
  func.func @_ffn_kernel(%arg0: i32, %arg1: i32, %arg2: memref<16x128xf32, #tpu.memory_space<vmem>>, %arg3: memref<128x128xf32, #tpu.memory_space<vmem>>, %arg4: memref<8x128xf32, #tpu.memory_space<vmem>>, %arg5: memref<128x128xf32, #tpu.memory_space<vmem>>, %arg6: memref<1x128xf32, #tpu.memory_space<vmem>>, %arg7: memref<16x128xf32, #tpu.memory_space<vmem>>, %arg8: memref<16x128xf32, #tpu.memory_space<vmem>>) attributes {dimension_semantics = [#tpu.dimension_semantics<parallel>, #tpu.dimension_semantics<arbitrary>], iteration_bounds = array<i64: 1, 1>, scalar_prefetch = 0 : i64, scratch_operands = 1 : i64, tpu.core_type = #tpu.core_type<tc>, window_params = [{transform_indices = @transform_0, window_bounds = array<i64: 16, 128>}, {transform_indices = @transform_1, window_bounds = array<i64: 128, 128>}, {pipeline_mode = #tpu.pipeline_mode<synchronous>, transform_indices = @transform_2, window_bounds = array<i64: 8, 128>}, {transform_indices = @transform_3, window_bounds = array<i64: 128, 128>}, {pipeline_mode = #tpu.pipeline_mode<synchronous>, transform_indices = @transform_4, window_bounds = array<i64: 1, 128>}, {transform_indices = @transform_5, window_bounds = array<i64: 16, 128>}]} {
    %c0 = arith.constant 0 : index
    %c0_0 = arith.constant 0 : index
    %0 = vector.load %arg2[%c0, %c0_0] : memref<16x128xf32, #tpu.memory_space<vmem>>, vector<16x128xf32>
    %c0_1 = arith.constant 0 : index
    %c0_2 = arith.constant 0 : index
    %1 = vector.load %arg3[%c0_1, %c0_2] : memref<128x128xf32, #tpu.memory_space<vmem>>, vector<128x128xf32>
    %cst = arith.constant dense<0.000000e+00> : vector<16x128xf32>
    %2 = tpu.matmul %0, %1, %cst {dimension_numbers = #tpu.dot_dimension_numbers<[1], [0], [0], [1], [0, 0, 1, 1], [], []>} : vector<16x128xf32>, vector<128x128xf32>, vector<16x128xf32> -> vector<16x128xf32>
    %3 = arith.index_cast %arg1 : i32 to index
    %c0_3 = arith.constant 0 : index
    %4 = vector.load %arg4[%3, %c0_3] : memref<8x128xf32, #tpu.memory_space<vmem>>, vector<1x128xf32>
    %5 = vector.broadcast %4 : vector<1x128xf32> to vector<16x128xf32>
    %6 = arith.addf %2, %5 : vector<16x128xf32>
    %cst_4 = arith.constant 0.000000e+00 : f32
    %7 = vector.broadcast %cst_4 : f32 to vector<16x128xf32>
    %8 = arith.maximumf %6, %7 : vector<16x128xf32>
    %c0_5 = arith.constant 0 : index
    %c0_6 = arith.constant 0 : index
    %9 = vector.load %arg5[%c0_5, %c0_6] : memref<128x128xf32, #tpu.memory_space<vmem>>, vector<128x128xf32>
    %cst_7 = arith.constant dense<0.000000e+00> : vector<16x128xf32>
    %10 = tpu.matmul %8, %9, %cst_7 {dimension_numbers = #tpu.dot_dimension_numbers<[1], [0], [0], [1], [0, 0, 1, 1], [], []>} : vector<16x128xf32>, vector<128x128xf32>, vector<16x128xf32> -> vector<16x128xf32>
    %c0_i32 = arith.constant 0 : i32
    %11 = arith.cmpi eq, %arg1, %c0_i32 : i32
    %12 = arith.extui %11 : i1 to i32
    %c0_i32_8 = arith.constant 0 : i32
    %13 = arith.cmpi ne, %12, %c0_i32_8 : i32
    scf.if %13 {
      %c0_13 = arith.constant 0 : index
      %c0_14 = arith.constant 0 : index
      %20 = vector.load %arg8[%c0_13, %c0_14] : memref<16x128xf32, #tpu.memory_space<vmem>>, vector<16x128xf32>
      tpu.vector_store %arg8[%c0_13, %c0_14], %10 {strides = array<i32>} : memref<16x128xf32, #tpu.memory_space<vmem>>, vector<16x128xf32>,
    } else {
    }
    %c0_i32_9 = arith.constant 0 : i32
    %14 = arith.cmpi sgt, %arg1, %c0_i32_9 : i32
    %15 = arith.extui %14 : i1 to i32
    %c0_i32_10 = arith.constant 0 : i32
    %16 = arith.cmpi ne, %15, %c0_i32_10 : i32
    scf.if %16 {
      %c0_13 = arith.constant 0 : index
      %c0_14 = arith.constant 0 : index
      %20 = vector.load %arg8[%c0_13, %c0_14] : memref<16x128xf32, #tpu.memory_space<vmem>>, vector<16x128xf32>
      %21 = arith.addf %20, %10 : vector<16x128xf32>
      %c0_15 = arith.constant 0 : index
      %c0_16 = arith.constant 0 : index
      %22 = vector.load %arg8[%c0_15, %c0_16] : memref<16x128xf32, #tpu.memory_space<vmem>>, vector<16x128xf32>
      tpu.vector_store %arg8[%c0_15, %c0_16], %21 {strides = array<i32>} : memref<16x128xf32, #tpu.memory_space<vmem>>, vector<16x128xf32>,
    } else {
    }
    %c0_i32_11 = arith.constant 0 : i32
    %17 = arith.cmpi eq, %arg1, %c0_i32_11 : i32
    %18 = arith.extui %17 : i1 to i32
    %c0_i32_12 = arith.constant 0 : i32
    %19 = arith.cmpi ne, %18, %c0_i32_12 : i32
    scf.if %19 {
      %c0_13 = arith.constant 0 : index
      %c0_14 = arith.constant 0 : index
      %20 = vector.load %arg8[%c0_13, %c0_14] : memref<16x128xf32, #tpu.memory_space<vmem>>, vector<16x128xf32>
      %c0_15 = arith.constant 0 : index
      %c0_16 = arith.constant 0 : index
      %21 = vector.load %arg6[%c0_15, %c0_16] : memref<1x128xf32, #tpu.memory_space<vmem>>, vector<1x128xf32>
      %22 = vector.broadcast %21 : vector<1x128xf32> to vector<16x128xf32>
      %23 = arith.addf %20, %22 : vector<16x128xf32>
      %c0_17 = arith.constant 0 : index
      %c0_18 = arith.constant 0 : index
      %24 = vector.load %arg7[%c0_17, %c0_18] : memref<16x128xf32, #tpu.memory_space<vmem>>, vector<16x128xf32>
      tpu.vector_store %arg7[%c0_17, %c0_18], %23 {strides = array<i32>} : memref<16x128xf32, #tpu.memory_space<vmem>>, vector<16x128xf32>,
    } else {
    }
    return
  }
  func.func @transform_0(%arg0: i32, %arg1: i32) -> (i32, i32) {
    %c0_i32 = arith.constant 0 : i32
    %c0_i32_0 = arith.constant 0 : i32
    return %arg0, %c0_i32 : i32, i32
  }
  func.func @transform_1(%arg0: i32, %arg1: i32) -> (i32, i32) {
    %c0_i32 = arith.constant 0 : i32
    %c0_i32_0 = arith.constant 0 : i32
    return %c0_i32, %arg1 : i32, i32
  }
  func.func @transform_2(%arg0: i32, %arg1: i32) -> (i32, i32) {
    %c0_i32 = arith.constant 0 : i32
    %c0_i32_0 = arith.constant 0 : i32
    %c0_i32_1 = arith.constant 0 : i32
    return %c0_i32, %c0_i32_0 : i32, i32
  }
  func.func @transform_3(%arg0: i32, %arg1: i32) -> (i32, i32) {
    %c0_i32 = arith.constant 0 : i32
    %c0_i32_0 = arith.constant 0 : i32
    return %arg1, %c0_i32 : i32, i32
  }
  func.func @transform_4(%arg0: i32, %arg1: i32) -> (i32, i32) {
    %c0_i32 = arith.constant 0 : i32
    %c0_i32_0 = arith.constant 0 : i32
    %c0_i32_1 = arith.constant 0 : i32
    return %c0_i32, %c0_i32_0 : i32, i32
  }
  func.func @transform_5(%arg0: i32, %arg1: i32) -> (i32, i32) {
    %c0_i32 = arith.constant 0 : i32
    %c0_i32_0 = arith.constant 0 : i32
    return %arg0, %c0_i32 : i32, i32
  }
}

</mosaic_0001>

<bundles_post_ra>
// kernel: feed_forward.1
= control target key start
LH: loop header
LB: loop body
LE: loop exit
PB: predicated region body
PF: predicated region fallthrough
CT: control target
= control target key end

     0   :  { %s563_s1 = inlined_call_operand.vmem [shape: f32[128,128], index: 1, kind: input, shape index: {}]   ;;  %s564_s0 = inlined_call_operand.vmem [shape: f32[16,128], index: 0, kind: input, shape index: {}]   ;;  %s565_s3 = inlined_call_operand.vmem [shape: f32[128,128], index: 3, kind: input, shape index: {}]   ;;  %s566_s2 = inlined_call_operand.vmem [shape: f32[8,128], index: 2, kind: input, shape index: {}]   ;;  %s567_s4 = inlined_call_operand.vmem [shape: f32[1,128], index: 4, kind: input, shape index: {}]   ;;  %s568_s5 = inlined_call_operand.vmem [shape: f32[16,128], index: 5, kind: output, shape index: {}]  }
   0x1   :  { %v22_v0 = vld [vmem:[%s563_s1] sm:$0xff]  ;;  %v23_v1 = vld [vmem:[%s563_s1 + $0x8] sm:$0xff]  ;;  %v24_v2 = vld [vmem:[%s563_s1 + $0x10] sm:$0xff] }
   0x2   :  { %v355_v3 = vpack.c.bf16 %v23_v1, %v22_v0  ;;  %v25_v4 = vld [vmem:[%s563_s1 + $0x18] sm:$0xff]  ;;  %v26_v6 = vld [vmem:[%s563_s1 + $0x20] sm:$0xff]  ;;  %v27_v7 = vld [vmem:[%s563_s1 + $0x28] sm:$0xff] }
   0x3   :  { %v359_v5 = vpack.c.bf16 %v25_v4, %v24_v2  ;;  %v363_v8 = vpack.c.bf16 %v27_v7, %v26_v6  ;;  %v28_v9 = vld [vmem:[%s563_s1 + $0x30] sm:$0xff]  ;;  %v29_v10 = vld [vmem:[%s563_s1 + $0x38] sm:$0xff]  ;;  %v20_v11 = vld [vmem:[%s564_s0] sm:$0xff] }
   0x4   :  { %356 = vmatprep.subr.bf16.mxu0 %v355_v3  ;;  %317 = vmatprep.mubr.f32.mxu0 %v20_v11  ;;  %v120_v12 = vld [vmem:[%s565_s3] sm:$0xff]  ;;  %v121_v13 = vld [vmem:[%s565_s3 + $0x8] sm:$0xff]  ;;  %v122_v14 = vld [vmem:[%s565_s3 + $0x10] sm:$0xff]  ;;  %v367_v20 = vpack.c.bf16 %v29_v10, %v28_v9 }
   0x5   :  { %358 = vmatpush3.bf16.msra.mxu0 %v355_v3  ;;  %v387_v15 = vpack.c.bf16 %v121_v13, %v120_v12  ;;  %v123_v16 = vld [vmem:[%s565_s3 + $0x18] sm:$0xff]  ;;  %v124_v18 = vld [vmem:[%s565_s3 + $0x20] sm:$0xff]  ;;  %v125_v19 = vld [vmem:[%s565_s3 + $0x28] sm:$0xff] }
   0x6   :  { %360 = vmatprep.subr.bf16.mxu0 %v359_v5  ;;  %v391_v17 = vpack.c.bf16 %v123_v16, %v122_v14  ;;  %v30_v21 = vld [vmem:[%s563_s1 + $0x40] sm:$0xff]  ;;  %v31_v22 = vld [vmem:[%s563_s1 + $0x48] sm:$0xff]  ;;  %v395_v23 = vpack.c.bf16 %v125_v19, %v124_v18  ;;  %v126_v24 = vld [vmem:[%s565_s3 + $0x30] sm:$0xff] }
   0x7   :  { %388 = vmatprep.subr.bf16.mxu1 %v387_v15  ;;  %v127_v25 = vld [vmem:[%s565_s3 + $0x38] sm:$0xff]  ;;  %v371_v26 = vpack.c.bf16 %v31_v22, %v30_v21  ;;  %v32_v27 = vld [vmem:[%s563_s1 + $0x50] sm:$0xff]  ;;  %v128_v30 = vld [vmem:[%s565_s3 + $0x40] sm:$0xff] }
   0x8   :  { %390 = vmatpush3.bf16.msra.mxu1 %v387_v15  ;;  %v33_v28 = vld [vmem:[%s563_s1 + $0x58] sm:$0xff]  ;;  %v399_v29 = vpack.c.bf16 %v127_v25, %v126_v24  ;;  %v129_v31 = vld [vmem:[%s565_s3 + $0x48] sm:$0xff]  ;;  %v34_v33 = vld [vmem:[%s563_s1 + $0x60] sm:$0xff] }
   0x9   :  { %362 = vmatpush3.bf16.msra.mxu0 %v359_v5  ;;  %392 = vmatprep.subr.bf16.mxu1 %v391_v17  ;;  %v375_v32 = vpack.c.bf16 %v33_v28, %v32_v27  ;;  %v35_v34 = vld [vmem:[%s563_s1 + $0x68] sm:$0xff]  ;;  %v403_v35 = vpack.c.bf16 %v129_v31, %v128_v30  ;;  %v130_v36 = vld [vmem:[%s565_s3 + $0x50] sm:$0xff]  ;;  %v131_v37 = vld [vmem:[%s565_s3 + $0x58] sm:$0xff] }
   0xa   :  { %364 = vmatprep.subr.bf16.mxu0 %v363_v8  ;;  %v379_v38 = vpack.c.bf16 %v35_v34, %v34_v33  ;;  %v36_v39 = vld [vmem:[%s563_s1 + $0x70] sm:$0xff]  ;;  %v37_v40 = vld [vmem:[%s563_s1 + $0x78] sm:$0xff]  ;;  %v407_v41 = vpack.c.bf16 %v131_v37, %v130_v36  ;;  %v132_v42 = vld [vmem:[%s565_s3 + $0x60] sm:$0xff] }
   0xb   :  { %v133_v43 = vld [vmem:[%s565_s3 + $0x68] sm:$0xff]  ;;  %v383_v44 = vpack.c.bf16 %v37_v40, %v36_v39  ;;  %v134_v47 = vld [vmem:[%s565_s3 + $0x70] sm:$0xff]  ;;  %v135_v48 = vld [vmem:[%s565_s3 + $0x78] sm:$0xff] }
   0xc   :  { %394 = vmatpush3.bf16.msra.mxu1 %v391_v17  ;;  %v411_v45 = vpack.c.bf16 %v133_v43, %v132_v42  ;;  %v21_v46 = vld [vmem:[%s564_s0 + $0x8] sm:$0xff]  ;;  %v415_v49 = vpack.c.bf16 %v135_v48, %v134_v47  ;;  %v247_v50 = vld [vmem:[%s566_s2] ss:$0 sm:$0xff] }
   0xd   :  { %366 = vmatpush3.bf16.msra.mxu0 %v363_v8  ;;  %396 = vmatprep.subr.bf16.mxu1 %v395_v23  ;;  %v248_v57 = vld [vmem:[%s567_s4] ss:$0 sm:$0xff] }
   0xe   :  { %368 = vmatprep.subr.bf16.mxu0 %v367_v20 }
  0x10   :  { %398 = vmatpush3.bf16.msra.mxu1 %v395_v23 }
  0x11   :  { %370 = vmatpush3.bf16.msra.mxu0 %v367_v20  ;;  %400 = vmatprep.subr.bf16.mxu1 %v399_v29 }
  0x12   :  { %372 = vmatprep.subr.bf16.mxu0 %v371_v26 }
  0x14   :  { %402 = vmatpush3.bf16.msra.mxu1 %v399_v29 }
  0x15   :  { %374 = vmatpush3.bf16.msra.mxu0 %v371_v26  ;;  %404 = vmatprep.subr.bf16.mxu1 %v403_v35 }
  0x16   :  { %376 = vmatprep.subr.bf16.mxu0 %v375_v32 }
  0x18   :  { %406 = vmatpush3.bf16.msra.mxu1 %v403_v35 }
  0x19   :  { %378 = vmatpush3.bf16.msra.mxu0 %v375_v32  ;;  %408 = vmatprep.subr.bf16.mxu1 %v407_v41 }
  0x1a   :  { %380 = vmatprep.subr.bf16.mxu0 %v379_v38 }
  0x1c   :  { %410 = vmatpush3.bf16.msra.mxu1 %v407_v41 }
  0x1d   :  { %382 = vmatpush3.bf16.msra.mxu0 %v379_v38  ;;  %412 = vmatprep.subr.bf16.mxu1 %v411_v45 }
  0x1e   :  { %384 = vmatprep.subr.bf16.mxu0 %v383_v44 }
  0x20   :  { %414 = vmatpush3.bf16.msra.mxu1 %v411_v45 }
  0x21   :  { %386 = vmatpush3.bf16.msra.mxu0 %v383_v44  ;;  %416 = vmatprep.subr.bf16.mxu1 %v415_v49 }
  0x24   :  { %318 = vmatmul.mubr.f32.vlgmr.msra.gmra.mrb[0].mxu0 %v21_v46  ;;  %418 = vmatpush3.bf16.msra.mxu1 %v415_v49 }
  0xf7   :  { %v319_v51 = vpop.f32.mrb[0].mxu0 }
  0xf8   :  { %v115_v52 = vadd.f32 %v319_v51, %v247_v50  ;;  %v109_v53 = vpop.f32.mrb[1].mxu0 }
  0xf9   :  { %v110_v54 = vadd.f32 %v247_v50, %v109_v53 }
  0xfa   :  { %v119_v56 = vmax.f32 %v115_v52, 0.0 }
  0xfb   :  { %v118_v55 = vmax.f32 %v110_v54, 0.0 }
  0xfd   :  { %352 = vmatprep.mubr.f32.mxu1 %v118_v55 }
  0xfe   :  { %353 = vmatmul.mubr.f32.vlgmr.msra.gmra.mrb[0].mxu1 %v119_v56 }
 0x1d1   :  { %v354_v58 = vpop.f32.mrb[0].mxu1 }
 0x1d2   :  { %v240_v59 = vadd.f32 %v354_v58, %v248_v57  ;;  %v202_v60 = vpop.f32.mrb[1].mxu1 }
 0x1d3   :  { %v239_v61 = vadd.f32 %v248_v57, %v202_v60 }
 0x1d4   :  { %242 = vst [vmem:[%s568_s5 + $0x8] sm:$0xff] %v240_v59 }
 0x1d5   :  { %241 = vst [vmem:[%s568_s5] sm:$0xff] %v239_v61 }

</bundles_post_ra>
